<compile_context>
chip_gen: v7x
topology: tpu7x:2x2x1
jax: 0.10.0
libtpu: 0.0.40
codegen_flags: <defaults>
</compile_context>

<pallas_src>
import jax
import jax.numpy as jnp
from jax import lax
from jax.experimental import pallas as pl
from jax.experimental.pallas import tpu as pltpu


_NEG_SLOPE = 0.2    # LeakyReLU negative slope


# ---------------------------------------------------------------------------
# Kernel
# ---------------------------------------------------------------------------
def _double_ds_kernel(x_ref, g1_ref, s1_ref, b1_ref, g2_ref, s2_ref, b2_ref,
                      o_ref, pad1_ref, pad2_ref):
    """Fused DoubleDSConv for one batch block; intermediates never leave VMEM.

    x_ref:   (nb, H, W*Cin)              lane-dense NHWC input
    g*_ref:  (3, (W+2)*C, W*Cout) bf16   block-Toeplitz (depthwise x pointwise) weights
    s*_ref, b*_ref: (1, W*Cout)          folded eval-mode BatchNorm scale / bias
    o_ref:   (nb, H, W*Cout)             lane-dense output
    pad*_ref: (H+2, (W+2)*C) f32         zero-padded activation scratch
    """
    nb, H, _ = x_ref.shape

    def ds_ic_block(pad_ref, x2d, g_ref, scale, bias):
        w2c = pad_ref.shape[1]                 # (W+2)*C
        wc = x2d.shape[1]                      # W*C
        c = (w2c - wc) // 2                    # C
        h = pad_ref.shape[0] - 2               # H

        # ---- halo-only zeroing (interior is fully overwritten below) ------
        zrow = jnp.zeros((1, w2c), jnp.float32)
        pad_ref[0:1, :] = zrow
        pad_ref[h + 1:h + 2, :] = zrow
        zcol = jnp.zeros((h, c), jnp.float32)
        pad_ref[1:h + 1, 0:c] = zcol
        pad_ref[1:h + 1, c + wc:w2c] = zcol

        # ---- place input into the interior window -------------------------
        pad_ref[1:h + 1, c:c + wc] = x2d

        # ---- depthwise 3x3 + pointwise 1x1 as 3 MXU matmuls ----------------
        # band_kh[h, j*C+c] = x_pad[h+kh, j, c]; G_kh holds wdw[kh]*wpw in
        # block-Toeplitz form, so MXU does all 9 taps; only 2 VPU adds remain.
        acc = None
        for kh in range(3):
            band = pad_ref[kh:kh + h, :].astype(jnp.bfloat16)
            part = jnp.dot(band, g_ref[kh], preferred_element_type=jnp.float32)
            acc = part if acc is None else acc + part

        # ---- LeakyReLU(0.2) + ICLayer (eval-mode BN fold) ------------------
        y = jnp.maximum(acc, _NEG_SLOPE * acc)
        return y * scale + bias                # (H, W*Cout) f32

    s1 = s1_ref[...]
    b1 = b1_ref[...]
    s2 = s2_ref[...]
    b2 = b2_ref[...]

    for i in range(nb):                        # static batch-block loop
        x2d = x_ref[i]                                         # (H, W*Cin)
        y1 = ds_ic_block(pad1_ref, x2d, g1_ref, s1, b1)        # (H, W*Cout)
        y2 = ds_ic_block(pad2_ref, y1, g2_ref, s2, b2)         # (H, W*Cout)
        o_ref[i] = y2.astype(o_ref.dtype)


# ---------------------------------------------------------------------------
# Wrapper
# ---------------------------------------------------------------------------
def _toeplitz_weights(w_dw, w_pw, width):
    """Fold depthwise (3,3,C) and pointwise (C,Cout) into block-Toeplitz weights.

    Returns (3, (W+2)*C, W*Cout) with
      G[kh, (w+kw)*C + c, w*Cout + co] = w_dw[kh, kw, c] * w_pw[c, co].
    """
    c, cout = w_pw.shape
    taps = w_dw[:, :, :, None] * w_pw[None, None, :, :]        # (3, 3, C, Cout)
    g = jnp.zeros((3, (width + 2) * c, width * cout), jnp.float32)
    for w in range(width):
        for kw in range(3):
            g = g.at[:, (w + kw) * c:(w + kw + 1) * c,
                     w * cout:(w + 1) * cout].set(taps[:, kw])
    return g


def _vmem_limit_bytes(H, W, Cin, Cout, nb):
    f32, bf16 = 4, 2
    pads = (H + 2) * (W + 2) * (Cin + Cout) * f32
    wts = 3 * (W + 2) * (Cin + Cout) * W * Cout * bf16 * 2     # double-buffered
    io = 2 * nb * H * W * (Cin + Cout) * f32                   # double-buffered I/O
    sb = 4 * 2 * W * Cout * f32
    need = pads + wts + io + sb
    # generous margin, but never ask for more than 48 MiB (v7x has 64 MiB/TC)
    return int(min(48 * 1024 * 1024, max(8 * 1024 * 1024, 4 * need)))


def double_ds_conv(x_nchw, params, *, batch_block=1):
    """Forward pass of DoubleDSConv. Input/output layout: NCHW (PyTorch)."""
    x = jnp.transpose(x_nchw, (0, 2, 3, 1)).astype(jnp.float32)   # NCHW -> NHWC
    N, H, W, Cin = x.shape
    Cout = params["w_pw1"].shape[1]
    nb = batch_block
    assert N % nb == 0, (N, nb)

    # Fold DSConv weights into block-Toeplitz MXU weights (bf16 operands).
    g1 = _toeplitz_weights(params["w_dw1"], params["w_pw1"], W).astype(jnp.bfloat16)
    g2 = _toeplitz_weights(params["w_dw2"], params["w_pw2"], W).astype(jnp.bfloat16)

    # Broadcast folded BN scale/bias to the lane-dense (W*Cout) layout.
    def dense(v):
        return jnp.tile(v.astype(jnp.float32), W).reshape(1, W * Cout)
    s1, b1 = dense(params["s1"]), dense(params["b1"])
    s2, b2 = dense(params["s2"]), dense(params["b2"])

    x2d = x.reshape(N, H, W * Cin)                              # lane-dense input

    out2d = pl.pallas_call(
        _double_ds_kernel,
        out_shape=jax.ShapeDtypeStruct((N, H, W * Cout), jnp.float32),
        grid_spec=pltpu.PrefetchScalarGridSpec(
            num_scalar_prefetch=0,
            grid=(N // nb,),
            in_specs=[
                pl.BlockSpec((nb, H, W * Cin), lambda n: (n, 0, 0)),
                pl.BlockSpec((3, (W + 2) * Cin, W * Cout), lambda n: (0, 0, 0)),
                pl.BlockSpec((1, W * Cout), lambda n: (0, 0)),
                pl.BlockSpec((1, W * Cout), lambda n: (0, 0)),
                pl.BlockSpec((3, (W + 2) * Cout, W * Cout), lambda n: (0, 0, 0)),
                pl.BlockSpec((1, W * Cout), lambda n: (0, 0)),
                pl.BlockSpec((1, W * Cout), lambda n: (0, 0)),
            ],
            out_specs=pl.BlockSpec((nb, H, W * Cout), lambda n: (n, 0, 0)),
            scratch_shapes=[
                pltpu.VMEM((H + 2, (W + 2) * Cin), jnp.float32),
                pltpu.VMEM((H + 2, (W + 2) * Cout), jnp.float32),
            ],
        ),
        compiler_params=pltpu.CompilerParams(
            dimension_semantics=("parallel",),
            vmem_limit_bytes=_vmem_limit_bytes(H, W, Cin, Cout, nb),
        ),
    )(x2d, g1, s1, b1, g2, s2, b2)

    out = out2d.reshape(N, H, W, Cout)                          # free reshape
    return jnp.transpose(out, (0, 3, 1, 2))                     # NHWC -> NCHW


def init_double_ds_conv_params(key, in_channels, out_channels):
    """Deterministic parameter init matching the PyTorch module's shapes."""
    ks = jax.random.split(key, 4)
    eps = 1e-5

    def bn_fold(c):
        # Fresh BatchNorm2d: gamma=1, beta=0, running_mean=0, running_var=1.
        gamma = jnp.ones((c,), jnp.float32)
        beta = jnp.zeros((c,), jnp.float32)
        mean = jnp.zeros((c,), jnp.float32)
        var = jnp.ones((c,), jnp.float32)
        scale = gamma / jnp.sqrt(var + eps)
        bias = beta - mean * scale
        return scale, bias

    # Block 1: depthwise (in,1,3,3) stored as (3,3,in); pointwise (out,in,1,1) -> (in,out)
    w_dw1 = 0.1 * jax.random.normal(ks[0], (3, 3, in_channels), jnp.float32)
    w_pw1 = 0.1 * jax.random.normal(ks[1], (in_channels, out_channels), jnp.float32)
    s1, b1 = bn_fold(out_channels)

    # Block 2
    w_dw2 = 0.1 * jax.random.normal(ks[2], (3, 3, out_channels), jnp.float32)
    w_pw2 = 0.1 * jax.random.normal(ks[3], (out_channels, out_channels), jnp.float32)
    s2, b2 = bn_fold(out_channels)

    return {"w_dw1": w_dw1, "w_pw1": w_pw1, "s1": s1, "b1": b1,
            "w_dw2": w_dw2, "w_pw2": w_pw2, "s2": s2, "b2": b2}


# ---------------------------------------------------------------------------
# Pure-JAX reference (lax convs) for a correctness check.
# ---------------------------------------------------------------------------
def _ref_block(x_nchw, w_dw, w_pw, scale, bias):
    C = x_nchw.shape[1]
    w_dw_oihw = jnp.transpose(w_dw, (2, 0, 1))[:, None, :, :]
    y = lax.conv_general_dilated(
        x_nchw, w_dw_oihw, window_strides=(1, 1), padding=((1, 1), (1, 1)),
        dimension_numbers=("NCHW", "OIHW", "NCHW"), feature_group_count=C)
    w_pw_oihw = jnp.transpose(w_pw, (1, 0))[:, :, None, None]
    y = lax.conv_general_dilated(
        y, w_pw_oihw, window_strides=(1, 1), padding=((0, 0), (0, 0)),
        dimension_numbers=("NCHW", "OIHW", "NCHW"))
    y = jnp.where(y >= 0, y, 0.2 * y)
    return y * scale[None, :, None, None] + bias[None, :, None, None]


def double_ds_conv_ref(x_nchw, p):
    y = _ref_block(x_nchw, p["w_dw1"], p["w_pw1"], p["s1"], p["b1"])
    y = _ref_block(y, p["w_dw2"], p["w_pw2"], p["s2"], p["b2"])
    return y


if __name__ == "__main__":
    key = jax.random.PRNGKey(0)
    k_x, k_p = jax.random.split(key)

    N, Cin, Cout, H, W = 2, 4, 8, 16, 16
    x = jax.random.normal(k_x, (N, Cin, H, W), jnp.float32)
    params = init_double_ds_conv_params(k_p, Cin, Cout)

    out = jax.block_until_ready(double_ds_conv(x, params))
    ref = jax.block_until_ready(double_ds_conv_ref(x, params))

    assert out.shape == (N, Cout, H, W), out.shape
    # bf16 MXU operands -> loosened tolerance vs. the f32 reference.
    assert jnp.allclose(out, ref, atol=2e-3, rtol=2e-2), \
        float(jnp.max(jnp.abs(out - ref)))
    print("KERNEL_OK")
</pallas_src>

<mosaic_0001>
module attributes {stable_mosaic.version = 11 : i64} {
  func.func @_double_ds_kernel(%arg0: i32, %arg1: memref<1x16x64xf32, #tpu.memory_space<vmem>>, %arg2: memref<3x72x128xbf16, #tpu.memory_space<vmem>>, %arg3: memref<1x128xf32, #tpu.memory_space<vmem>>, %arg4: memref<1x128xf32, #tpu.memory_space<vmem>>, %arg5: memref<3x144x128xbf16, #tpu.memory_space<vmem>>, %arg6: memref<1x128xf32, #tpu.memory_space<vmem>>, %arg7: memref<1x128xf32, #tpu.memory_space<vmem>>, %arg8: memref<1x16x128xf32, #tpu.memory_space<vmem>>, %arg9: memref<18x72xf32, #tpu.memory_space<vmem>>, %arg10: memref<18x144xf32, #tpu.memory_space<vmem>>) attributes {dimension_semantics = [#tpu.dimension_semantics<parallel>], iteration_bounds = array<i64: 2>, scalar_prefetch = 0 : i64, scratch_operands = 2 : i64, tpu.core_type = #tpu.core_type<tc>, window_params = [{transform_indices = @transform_0, window_bounds = array<i64: 1, 16, 64>}, {pipeline_mode = #tpu.pipeline_mode<synchronous>, transform_indices = @transform_1, window_bounds = array<i64: 3, 72, 128>}, {pipeline_mode = #tpu.pipeline_mode<synchronous>, transform_indices = @transform_2, window_bounds = array<i64: 1, 128>}, {pipeline_mode = #tpu.pipeline_mode<synchronous>, transform_indices = @transform_3, window_bounds = array<i64: 1, 128>}, {pipeline_mode = #tpu.pipeline_mode<synchronous>, transform_indices = @transform_4, window_bounds = array<i64: 3, 144, 128>}, {pipeline_mode = #tpu.pipeline_mode<synchronous>, transform_indices = @transform_5, window_bounds = array<i64: 1, 128>}, {pipeline_mode = #tpu.pipeline_mode<synchronous>, transform_indices = @transform_6, window_bounds = array<i64: 1, 128>}, {transform_indices = @transform_7, window_bounds = array<i64: 1, 16, 128>}]} {
    %c0 = arith.constant 0 : index
    %c0_0 = arith.constant 0 : index
    %0 = vector.load %arg3[%c0, %c0_0] : memref<1x128xf32, #tpu.memory_space<vmem>>, vector<1x128xf32>
    %c0_1 = arith.constant 0 : index
    %c0_2 = arith.constant 0 : index
    %1 = vector.load %arg4[%c0_1, %c0_2] : memref<1x128xf32, #tpu.memory_space<vmem>>, vector<1x128xf32>
    %c0_3 = arith.constant 0 : index
    %c0_4 = arith.constant 0 : index
    %2 = vector.load %arg6[%c0_3, %c0_4] : memref<1x128xf32, #tpu.memory_space<vmem>>, vector<1x128xf32>
    %c0_5 = arith.constant 0 : index
    %c0_6 = arith.constant 0 : index
    %3 = vector.load %arg7[%c0_5, %c0_6] : memref<1x128xf32, #tpu.memory_space<vmem>>, vector<1x128xf32>
    %c0_7 = arith.constant 0 : index
    %c0_8 = arith.constant 0 : index
    %c0_9 = arith.constant 0 : index
    %4 = vector.load %arg1[%c0_7, %c0_8, %c0_9] : memref<1x16x64xf32, #tpu.memory_space<vmem>>, vector<1x16x64xf32>
    %5 = vector.shape_cast %4 : vector<1x16x64xf32> to vector<16x64xf32>
    %cst = arith.constant 0.000000e+00 : f32
    %6 = vector.broadcast %cst : f32 to vector<1x72xf32>
    %c0_10 = arith.constant 0 : index
    %c0_11 = arith.constant 0 : index
    %7 = vector.load %arg9[%c0_10, %c0_11] : memref<18x72xf32, #tpu.memory_space<vmem>>, vector<1x72xf32>
    tpu.vector_store %arg9[%c0_10, %c0_11], %6 {strides = array<i32>} : memref<18x72xf32, #tpu.memory_space<vmem>>, vector<1x72xf32>,
    %c17 = arith.constant 17 : index
    %c0_12 = arith.constant 0 : index
    %8 = vector.load %arg9[%c17, %c0_12] : memref<18x72xf32, #tpu.memory_space<vmem>>, vector<1x72xf32>
    tpu.vector_store %arg9[%c17, %c0_12], %6 {strides = array<i32>} : memref<18x72xf32, #tpu.memory_space<vmem>>, vector<1x72xf32>,
    %cst_13 = arith.constant 0.000000e+00 : f32
    %9 = vector.broadcast %cst_13 : f32 to vector<16x4xf32>
    %c1 = arith.constant 1 : index
    %c0_14 = arith.constant 0 : index
    %10 = vector.load %arg9[%c1, %c0_14] : memref<18x72xf32, #tpu.memory_space<vmem>>, vector<16x4xf32>
    tpu.vector_store %arg9[%c1, %c0_14], %9 {strides = array<i32>} : memref<18x72xf32, #tpu.memory_space<vmem>>, vector<16x4xf32>,
    %c1_15 = arith.constant 1 : index
    %c68 = arith.constant 68 : index
    %11 = vector.load %arg9[%c1_15, %c68] : memref<18x72xf32, #tpu.memory_space<vmem>>, vector<16x4xf32>
    tpu.vector_store %arg9[%c1_15, %c68], %9 {strides = array<i32>} : memref<18x72xf32, #tpu.memory_space<vmem>>, vector<16x4xf32>,
    %c1_16 = arith.constant 1 : index
    %c4 = arith.constant 4 : index
    %12 = vector.load %arg9[%c1_16, %c4] : memref<18x72xf32, #tpu.memory_space<vmem>>, vector<16x64xf32>
    tpu.vector_store %arg9[%c1_16, %c4], %5 {strides = array<i32>} : memref<18x72xf32, #tpu.memory_space<vmem>>, vector<16x64xf32>,
    %c0_17 = arith.constant 0 : index
    %c0_18 = arith.constant 0 : index
    %13 = vector.load %arg9[%c0_17, %c0_18] : memref<18x72xf32, #tpu.memory_space<vmem>>, vector<16x72xf32>
    %14 = arith.truncf %13 : vector<16x72xf32> to vector<16x72xbf16>
    %c0_19 = arith.constant 0 : index
    %c0_20 = arith.constant 0 : index
    %c0_21 = arith.constant 0 : index
    %15 = vector.load %arg2[%c0_19, %c0_20, %c0_21] : memref<3x72x128xbf16, #tpu.memory_space<vmem>>, vector<1x72x128xbf16>
    %16 = vector.shape_cast %15 : vector<1x72x128xbf16> to vector<72x128xbf16>
    %cst_22 = arith.constant dense<0.000000e+00> : vector<16x128xf32>
    %17 = tpu.matmul %14, %16, %cst_22 {dimension_numbers = #tpu.dot_dimension_numbers<[1], [0], [0], [1], [0, 0, 1, 1], [], []>} : vector<16x72xbf16>, vector<72x128xbf16>, vector<16x128xf32> -> vector<16x128xf32>
    %c1_23 = arith.constant 1 : index
    %c0_24 = arith.constant 0 : index
    %18 = vector.load %arg9[%c1_23, %c0_24] : memref<18x72xf32, #tpu.memory_space<vmem>>, vector<16x72xf32>
    %19 = arith.truncf %18 : vector<16x72xf32> to vector<16x72xbf16>
    %c1_25 = arith.constant 1 : index
    %c0_26 = arith.constant 0 : index
    %c0_27 = arith.constant 0 : index
    %20 = vector.load %arg2[%c1_25, %c0_26, %c0_27] : memref<3x72x128xbf16, #tpu.memory_space<vmem>>, vector<1x72x128xbf16>
    %21 = vector.shape_cast %20 : vector<1x72x128xbf16> to vector<72x128xbf16>
    %cst_28 = arith.constant dense<0.000000e+00> : vector<16x128xf32>
    %22 = tpu.matmul %19, %21, %cst_28 {dimension_numbers = #tpu.dot_dimension_numbers<[1], [0], [0], [1], [0, 0, 1, 1], [], []>} : vector<16x72xbf16>, vector<72x128xbf16>, vector<16x128xf32> -> vector<16x128xf32>
    %23 = arith.addf %17, %22 : vector<16x128xf32>
    %c2 = arith.constant 2 : index
    %c0_29 = arith.constant 0 : index
    %24 = vector.load %arg9[%c2, %c0_29] : memref<18x72xf32, #tpu.memory_space<vmem>>, vector<16x72xf32>
    %25 = arith.truncf %24 : vector<16x72xf32> to vector<16x72xbf16>
    %c2_30 = arith.constant 2 : index
    %c0_31 = arith.constant 0 : index
    %c0_32 = arith.constant 0 : index
    %26 = vector.load %arg2[%c2_30, %c0_31, %c0_32] : memref<3x72x128xbf16, #tpu.memory_space<vmem>>, vector<1x72x128xbf16>
    %27 = vector.shape_cast %26 : vector<1x72x128xbf16> to vector<72x128xbf16>
    %cst_33 = arith.constant dense<0.000000e+00> : vector<16x128xf32>
    %28 = tpu.matmul %25, %27, %cst_33 {dimension_numbers = #tpu.dot_dimension_numbers<[1], [0], [0], [1], [0, 0, 1, 1], [], []>} : vector<16x72xbf16>, vector<72x128xbf16>, vector<16x128xf32> -> vector<16x128xf32>
    %29 = arith.addf %23, %28 : vector<16x128xf32>
    %cst_34 = arith.constant 2.000000e-01 : f32
    %30 = vector.broadcast %cst_34 : f32 to vector<16x128xf32>
    %31 = arith.mulf %30, %29 : vector<16x128xf32>
    %32 = arith.maximumf %29, %31 : vector<16x128xf32>
    %33 = vector.broadcast %0 : vector<1x128xf32> to vector<16x128xf32>
    %34 = arith.mulf %32, %33 : vector<16x128xf32>
    %35 = vector.broadcast %1 : vector<1x128xf32> to vector<16x128xf32>
    %36 = arith.addf %34, %35 : vector<16x128xf32>
    %cst_35 = arith.constant 0.000000e+00 : f32
    %37 = vector.broadcast %cst_35 : f32 to vector<1x144xf32>
    %c0_36 = arith.constant 0 : index
    %c0_37 = arith.constant 0 : index
    %38 = vector.load %arg10[%c0_36, %c0_37] : memref<18x144xf32, #tpu.memory_space<vmem>>, vector<1x144xf32>
    tpu.vector_store %arg10[%c0_36, %c0_37], %37 {strides = array<i32>} : memref<18x144xf32, #tpu.memory_space<vmem>>, vector<1x144xf32>,
    %c17_38 = arith.constant 17 : index
    %c0_39 = arith.constant 0 : index
    %39 = vector.load %arg10[%c17_38, %c0_39] : memref<18x144xf32, #tpu.memory_space<vmem>>, vector<1x144xf32>
    tpu.vector_store %arg10[%c17_38, %c0_39], %37 {strides = array<i32>} : memref<18x144xf32, #tpu.memory_space<vmem>>, vector<1x144xf32>,
    %cst_40 = arith.constant 0.000000e+00 : f32
    %40 = vector.broadcast %cst_40 : f32 to vector<16x8xf32>
    %c1_41 = arith.constant 1 : index
    %c0_42 = arith.constant 0 : index
    %41 = vector.load %arg10[%c1_41, %c0_42] : memref<18x144xf32, #tpu.memory_space<vmem>>, vector<16x8xf32>
    tpu.vector_store %arg10[%c1_41, %c0_42], %40 {strides = array<i32>} : memref<18x144xf32, #tpu.memory_space<vmem>>, vector<16x8xf32>,
    %c1_43 = arith.constant 1 : index
    %c136 = arith.constant 136 : index
    %42 = vector.load %arg10[%c1_43, %c136] : memref<18x144xf32, #tpu.memory_space<vmem>>, vector<16x8xf32>
    tpu.vector_store %arg10[%c1_43, %c136], %40 {strides = array<i32>} : memref<18x144xf32, #tpu.memory_space<vmem>>, vector<16x8xf32>,
    %c1_44 = arith.constant 1 : index
    %c8 = arith.constant 8 : index
    %43 = vector.load %arg10[%c1_44, %c8] : memref<18x144xf32, #tpu.memory_space<vmem>>, vector<16x128xf32>
    tpu.vector_store %arg10[%c1_44, %c8], %36 {strides = array<i32>} : memref<18x144xf32, #tpu.memory_space<vmem>>, vector<16x128xf32>,
    %c0_45 = arith.constant 0 : index
    %c0_46 = arith.constant 0 : index
    %44 = vector.load %arg10[%c0_45, %c0_46] : memref<18x144xf32, #tpu.memory_space<vmem>>, vector<16x144xf32>
    %45 = arith.truncf %44 : vector<16x144xf32> to vector<16x144xbf16>
    %c0_47 = arith.constant 0 : index
    %c0_48 = arith.constant 0 : index
    %c0_49 = arith.constant 0 : index
    %46 = vector.load %arg5[%c0_47, %c0_48, %c0_49] : memref<3x144x128xbf16, #tpu.memory_space<vmem>>, vector<1x144x128xbf16>
    %47 = vector.shape_cast %46 : vector<1x144x128xbf16> to vector<144x128xbf16>
    %cst_50 = arith.constant dense<0.000000e+00> : vector<16x128xf32>
    %48 = tpu.matmul %45, %47, %cst_50 {dimension_numbers = #tpu.dot_dimension_numbers<[1], [0], [0], [1], [0, 0, 1, 1], [], []>} : vector<16x144xbf16>, vector<144x128xbf16>, vector<16x128xf32> -> vector<16x128xf32>
    %c1_51 = arith.constant 1 : index
    %c0_52 = arith.constant 0 : index
    %49 = vector.load %arg10[%c1_51, %c0_52] : memref<18x144xf32, #tpu.memory_space<vmem>>, vector<16x144xf32>
    %50 = arith.truncf %49 : vector<16x144xf32> to vector<16x144xbf16>
    %c1_53 = arith.constant 1 : index
    %c0_54 = arith.constant 0 : index
    %c0_55 = arith.constant 0 : index
    %51 = vector.load %arg5[%c1_53, %c0_54, %c0_55] : memref<3x144x128xbf16, #tpu.memory_space<vmem>>, vector<1x144x128xbf16>
    %52 = vector.shape_cast %51 : vector<1x144x128xbf16> to vector<144x128xbf16>
    %cst_56 = arith.constant dense<0.000000e+00> : vector<16x128xf32>
    %53 = tpu.matmul %50, %52, %cst_56 {dimension_numbers = #tpu.dot_dimension_numbers<[1], [0], [0], [1], [0, 0, 1, 1], [], []>} : vector<16x144xbf16>, vector<144x128xbf16>, vector<16x128xf32> -> vector<16x128xf32>
    %54 = arith.addf %48, %53 : vector<16x128xf32>
    %c2_57 = arith.constant 2 : index
    %c0_58 = arith.constant 0 : index
    %55 = vector.load %arg10[%c2_57, %c0_58] : memref<18x144xf32, #tpu.memory_space<vmem>>, vector<16x144xf32>
    %56 = arith.truncf %55 : vector<16x144xf32> to vector<16x144xbf16>
    %c2_59 = arith.constant 2 : index
    %c0_60 = arith.constant 0 : index
    %c0_61 = arith.constant 0 : index
    %57 = vector.load %arg5[%c2_59, %c0_60, %c0_61] : memref<3x144x128xbf16, #tpu.memory_space<vmem>>, vector<1x144x128xbf16>
    %58 = vector.shape_cast %57 : vector<1x144x128xbf16> to vector<144x128xbf16>
    %cst_62 = arith.constant dense<0.000000e+00> : vector<16x128xf32>
    %59 = tpu.matmul %56, %58, %cst_62 {dimension_numbers = #tpu.dot_dimension_numbers<[1], [0], [0], [1], [0, 0, 1, 1], [], []>} : vector<16x144xbf16>, vector<144x128xbf16>, vector<16x128xf32> -> vector<16x128xf32>
    %60 = arith.addf %54, %59 : vector<16x128xf32>
    %cst_63 = arith.constant 2.000000e-01 : f32
    %61 = vector.broadcast %cst_63 : f32 to vector<16x128xf32>
    %62 = arith.mulf %61, %60 : vector<16x128xf32>
    %63 = arith.maximumf %60, %62 : vector<16x128xf32>
    %64 = vector.broadcast %2 : vector<1x128xf32> to vector<16x128xf32>
    %65 = arith.mulf %63, %64 : vector<16x128xf32>
    %66 = vector.broadcast %3 : vector<1x128xf32> to vector<16x128xf32>
    %67 = arith.addf %65, %66 : vector<16x128xf32>
    %c0_64 = arith.constant 0 : index
    %c0_65 = arith.constant 0 : index
    %c0_66 = arith.constant 0 : index
    %68 = vector.load %arg8[%c0_64, %c0_65, %c0_66] : memref<1x16x128xf32, #tpu.memory_space<vmem>>, vector<1x16x128xf32>
    %69 = vector.shape_cast %68 : vector<1x16x128xf32> to vector<16x128xf32>
    %70 = vector.shape_cast %67 : vector<16x128xf32> to vector<1x16x128xf32>
    tpu.vector_store %arg8[%c0_64, %c0_65, %c0_66], %70 {strides = array<i32>} : memref<1x16x128xf32, #tpu.memory_space<vmem>>, vector<1x16x128xf32>,
    return
  }
  func.func @transform_0(%arg0: i32) -> (i32, i32, i32) {
    %c0_i32 = arith.constant 0 : i32
    %c0_i32_0 = arith.constant 0 : i32
    %c0_i32_1 = arith.constant 0 : i32
    return %arg0, %c0_i32, %c0_i32_0 : i32, i32, i32
  }
  func.func @transform_1(%arg0: i32) -> (i32, i32, i32) {
    %c0_i32 = arith.constant 0 : i32
    %c0_i32_0 = arith.constant 0 : i32
    %c0_i32_1 = arith.constant 0 : i32
    %c0_i32_2 = arith.constant 0 : i32
    return %c0_i32, %c0_i32_0, %c0_i32_1 : i32, i32, i32
  }
  func.func @transform_2(%arg0: i32) -> (i32, i32) {
    %c0_i32 = arith.constant 0 : i32
    %c0_i32_0 = arith.constant 0 : i32
    %c0_i32_1 = arith.constant 0 : i32
    return %c0_i32, %c0_i32_0 : i32, i32
  }
  func.func @transform_3(%arg0: i32) -> (i32, i32) {
    %c0_i32 = arith.constant 0 : i32
    %c0_i32_0 = arith.constant 0 : i32
    %c0_i32_1 = arith.constant 0 : i32
    return %c0_i32, %c0_i32_0 : i32, i32
  }
  func.func @transform_4(%arg0: i32) -> (i32, i32, i32) {
    %c0_i32 = arith.constant 0 : i32
    %c0_i32_0 = arith.constant 0 : i32
    %c0_i32_1 = arith.constant 0 : i32
    %c0_i32_2 = arith.constant 0 : i32
    return %c0_i32, %c0_i32_0, %c0_i32_1 : i32, i32, i32
  }
  func.func @transform_5(%arg0: i32) -> (i32, i32) {
    %c0_i32 = arith.constant 0 : i32
    %c0_i32_0 = arith.constant 0 : i32
    %c0_i32_1 = arith.constant 0 : i32
    return %c0_i32, %c0_i32_0 : i32, i32
  }
  func.func @transform_6(%arg0: i32) -> (i32, i32) {
    %c0_i32 = arith.constant 0 : i32
    %c0_i32_0 = arith.constant 0 : i32
    %c0_i32_1 = arith.constant 0 : i32
    return %c0_i32, %c0_i32_0 : i32, i32
  }
  func.func @transform_7(%arg0: i32) -> (i32, i32, i32) {
    %c0_i32 = arith.constant 0 : i32
    %c0_i32_0 = arith.constant 0 : i32
    %c0_i32_1 = arith.constant 0 : i32
    return %arg0, %c0_i32, %c0_i32_0 : i32, i32, i32
  }
}

</mosaic_0001>

<bundles_post_ra>
// kernel: tpu_custom_call.1
= control target key start
LH: loop header
LB: loop body
LE: loop exit
PB: predicated region body
PF: predicated region fallthrough
CT: control target
= control target key end

     0   :  { %12 = vsyncpa [#allocation5], 0  ;;  %s2036_s0 = inlined_call_operand.hbm [shape: f32[2,16,64], index: 0, kind: input, shape index: {}]   ;;  %s2037_s1 = inlined_call_operand.hbm [shape: bf16[3,72,128], index: 1, kind: input, shape index: {}]   ;;  %s2038_s2 = inlined_call_operand.vmem [shape: f32[1,128], index: 2, kind: input, shape index: {}]   ;;  %s2039_s3 = inlined_call_operand.vmem [shape: f32[1,128], index: 3, kind: input, shape index: {}]   ;;  %s2040_s4 = inlined_call_operand.hbm [shape: bf16[3,144,128], index: 4, kind: input, shape index: {}]   ;;  %s2041_s5 = inlined_call_operand.vmem [shape: f32[1,128], index: 5, kind: input, shape index: {}]   ;;  %s2042_s6 = inlined_call_operand.vmem [shape: f32[1,128], index: 6, kind: input, shape index: {}]   ;;  %s2043_s7 = inlined_call_operand.hbm [shape: f32[2,16,128], index: 7, kind: output, shape index: {}]  }
   0x1   :  { %14 = vsyncpa [#allocation5 + $0x1], 0 }
   0x2   :  { %15 = vsyncpa [#allocation8], 0 }
   0x3   :  { %16 = vsyncpa [#allocation6], 0 }
   0x4   :  { %18 = vsyncpa [#allocation6 + $0x1], 0  ;;  %s1698_s24 = smov 0   ;;  %s1700_s25 = smov 0  }
   0x5   :  { %s1702_s26 = smov 0   ;;  %s1704_s27 = smov 0  }
   0x6 LB: > { %s1719_s28 = sadd.s32 4294967295, %s1642_s27   ;;  %s1223_s29 = sadd.s32 4294967294, %s1642_s27   ;;  %s1642_s27 = sphi %s1704_s27, %s2063_s27   ;;  %s1638_s26 = sphi %s1702_s26, %s2062_s26   ;;  %s1634_s25 = sphi %s1700_s25, %s2061_s25   ;;  %s1630_s24 = sphi %s1698_s24, %s2060_s24  }
   0x7   : > { %p44_p0 = scmp.ne.s32.totalorder %s1634_s25, %s1630_s24  ;;  %p2044_p1 = scmp.eq.s32.totalorder %s1719_s28, 0 }
   0x8   : > { %p200_p3 = scmp.eq.s32.totalorder %s1223_s29, 1  ;;  %p1224_p5 = scmp.ge.s32.totalorder %s1642_s27, 1 }
   0x9   : > { %p1728_p4 = por %p2044_p1, %p44_p0  ;;  %p207_p7 = scmp.lt.s32.totalorder %s1642_s27, 3 }
   0xa   : > { %p1733_p6 = por %p200_p3, %p44_p0  ;;  %s1644_s10 = smov [#allocation7]  }
   0xb   : > { %s2047_s30 = scalar_select %p1728_p4, 1, 0 }
   0xc   : > { %s2048_s8 = scalar_select %p1733_p6, 1, 0 }
   0xd   : > { %p1738_p8 = pnand %p1224_p5, %p207_p7  ;;  %s219_s11 = sshll.u32 %s1644_s10, 4  ;;  %s1742_s11 = int_to_ptr.vmem [resolvable:$true] %s219_s11 }
   0xe   : > { %s1645_s13 = smov [#allocation9]   ;;  %s1486_s17 = scalar_lea.hbm %s2037_s1, 1728 }
   0xf   : > { %p1379_p9 = pneg %p1738_p8  ;;  %s238_s14 = sshll.u32 %s1645_s13, 4  ;;  %s1753_s14 = int_to_ptr.vmem [resolvable:$true] %s238_s14 }
  0x10   : > { %p1487_p12 = scmp.ne.s32.totalorder %s2037_s1, %s1486_s17  ;;  %p1493_p5 = scmp.lt.u32.totalorder %s1486_s17, %s2037_s1 }
  0x11   : > { %p1749_p11 = pnand %p1379_p9, %p2044_p1 }
  0x13   : > { %p1488_p13 = pneg %p1749_p11 }
  0x15   : > { %p1489_p0 = pnand %p1488_p13, %p1487_p12 }
  0x17   : > { %p1490_p3 = pneg %p1489_p0 }
  0x19   : > { %p1495_p7 = pnand %p1493_p5, %p1490_p3 }
  0x1b   : > { %1498 = shalt.err (!%p1495_p7)
}
  0x1c   : > { %s1499_s22 = scalar_lea.vmem %s1742_s11, 1728  ;;  %p1507_p2 = scmp.lt.s32.totalorder %s1742_s11, %s1742_s11 }
  0x1d   : > { %p1500_p9 = scmp.ne.s32.totalorder %s1742_s11, %s1499_s22  ;;  %p1508_p12 = scmp.lt.s32.totalorder %s1499_s22, %s1499_s22 }
  0x1f   : > { %p1502_p10 = pnand %p1500_p9, %p1488_p13  ;;  %p1509_p0 = por %p1508_p12, %p1507_p2 }
  0x21   : > { %p1503_p1 = pneg %p1502_p10 }
  0x23   : > { %p1510_p6 = pnand %p1509_p0, %p1503_p1 }
  0x25   : > { %1513 = shalt.err (!%p1510_p6)
}
  0x26   : > { %s1646_s23 = smov 64   ;;  %s1647_s29 = smov 4  }
  0x27   : > { %1382 = dma.hbm_to_vmem [thread:$0]  (!%p1749_p11), %s2037_s1, 1728, %s1742_s11, [#allocation8], %s1646_s23, %s1646_s23, %s1647_s29  }
  0x28   : > { %s1514_s17 = scalar_lea.hbm %s2040_s4, 3456 }
  0x29   : > { %p1515_p2 = scmp.ne.s32.totalorder %s2040_s4, %s1514_s17  ;;  %p1521_p10 = scmp.lt.u32.totalorder %s1514_s17, %s2040_s4 }
  0x2b   : > { %p1517_p1 = pnand %p1515_p2, %p1488_p13 }
  0x2d   : > { %p1518_p6 = pneg %p1517_p1 }
  0x2f   : > { %p1523_p3 = pnand %p1521_p10, %p1518_p6 }
  0x31   : > { %1526 = shalt.err (!%p1523_p3)
}
  0x32   : > { %s1527_s11 = scalar_lea.vmem %s1753_s14, 3456  ;;  %p1535_p12 = scmp.lt.s32.totalorder %s1753_s14, %s1753_s14 }
  0x33   : > { %p1528_p5 = scmp.ne.s32.totalorder %s1753_s14, %s1527_s11  ;;  %p1536_p0 = scmp.lt.s32.totalorder %s1527_s11, %s1527_s11 }
  0x35   : > { %p1530_p7 = pnand %p1528_p5, %p1488_p13  ;;  %p1537_p2 = por %p1536_p0, %p1535_p12 }
  0x37   : > { %p1531_p9 = pneg %p1530_p7 }
  0x39   : > { %p1538_p1 = pnand %p1537_p2, %p1531_p9 }
  0x3b   : > { %1541 = shalt.err (!%p1538_p1)
}
  0x3c   : > { %1385 = dma.hbm_to_vmem [thread:$0]  (!%p1749_p11), %s2040_s4, 3456, %s1753_s14, [#allocation8], %s1646_s23, %s1646_s23, %s1647_s29  }
  0x3d   : > { %s1808_s13 = sadd.s32 1, %s1642_s27   ;;  %s31_s12 = sadd.s32 1, %s1638_s26 }
  0x3e   : > { %s28_s15 = ssub.s32 %s1642_s27, %s1808_s13  ;;  %p38_p13 = scmp.ne.s32.totalorder %s1638_s26, %s1634_s25 }
  0x3f   : > { %p29_p6 = scmp.eq.s32.totalorder %s28_s15, 0  ;;  %p39_p10 = scmp.eq.s32.totalorder %s1642_s27, 0 }
  0x40   : > { %p2051_p3 = scmp.eq.s32.totalorder %s1719_s28, 1  ;;  %p1396_p7 = scmp.lt.s32.totalorder %s1642_s27, 2 }
  0x41   : > { %s1824_s17 = scalar_select %p29_p6, %s1638_s26, %s31_s12  }
  0x42   : > { %p1818_p5 = por %p2051_p3, %p38_p13  ;;  %p40_p9 = por %p39_p10, %p38_p13 }
  0x43   : > { %s258_s18 = sand.u32 1, %s1638_s26   ;;  %s1293_s14 = sshll.u32 %s1642_s27, 8 }
  0x44   : > { %s2052_s16 = scalar_select %p1818_p5, 1, 0 }
  0x45   : > { %s1228_s19 = sshll.u32 %s258_s18, 4  ;;  %s1831_s20 = scalar_lea.hbm %s2036_s0, %s1293_s14 }
  0x46   : > { %s262_s21 = scalar_lea.vmem [#allocation4], %s1228_s19  ;;  %p1835_p11 = pnand %p1396_p7, %p40_p9 }
  0x47   : > { %s269_s11 = sshll.u32 %s262_s21, 4  ;;  %s1839_s10 = scalar_lea.sflag [#allocation5], %s258_s18  ;;  %s1833_s11 = int_to_ptr.vmem [resolvable:$true] %s269_s11 }
  0x48   : > { %s1542_s12 = scalar_lea.hbm %s1831_s20, 256  ;;  %p1544_p0 = pneg %p1835_p11 }
  0x49   : > { %p1543_p12 = scmp.ne.s32.totalorder %s1831_s20, %s1542_s12  ;;  %s1547_s14 = scalar_lea.hbm %s2036_s0, 512 }
  0x4a   : > { %p1548_p13 = scmp.lt.u32.totalorder %s1831_s20, %s2036_s0  ;;  %p1549_p6 = scmp.lt.u32.totalorder %s1547_s14, %s1542_s12 }
  0x4b   : > { %p1545_p2 = pnand %p1544_p0, %p1543_p12  ;;  %p1551_p3 = scmp.lt.u32.totalorder %s1542_s12, %s1831_s20 }
  0x4c   : > { %p1550_p10 = por %p1549_p6, %p1548_p13 }
  0x4d   : > { %p1546_p1 = pneg %p1545_p2 }
  0x4e   : > { %p1552_p7 = por %p1551_p3, %p1550_p10 }
  0x50   : > { %p1553_p9 = pnand %p1552_p7, %p1546_p1 }
  0x52   : > { %1556 = shalt.err (!%p1553_p9)
}
  0x53   : > { %s1557_s18 = scalar_lea.vmem %s1833_s11, 256  ;;  %s1648_s21 = smov [#allocation4]  }
  0x54   : > { %p1558_p12 = scmp.ne.s32.totalorder %s1833_s11, %s1557_s18  ;;  %s1562_s15 = sshll.u32 %s1648_s21, 4  ;;  %s1563_s15 = int_to_ptr.vmem [resolvable:$false] %s1562_s15 }
  0x55   : > { %s1564_s19 = scalar_lea.vmem %s1563_s15, 512  ;;  %p1565_p4 = scmp.lt.s32.totalorder %s1833_s11, %s1563_s15 }
  0x56   : > { %p1560_p2 = pnand %p1558_p12, %p1544_p0  ;;  %p1566_p13 = scmp.lt.s32.totalorder %s1564_s19, %s1557_s18 }
  0x58   : > { %p1561_p5 = pneg %p1560_p2  ;;  %p1567_p6 = por %p1566_p13, %p1565_p4 }
  0x5a   : > { %p1568_p10 = pnand %p1567_p6, %p1561_p5 }
  0x5c   : > { %1571 = shalt.err (!%p1568_p10)
}
  0x5d   : > { %s1649_s12 = smov 128   ;;  %s1650_s14 = smov 8  }
  0x5e   : > { %1389 = dma.hbm_to_vmem [thread:$0]  (!%p1835_p11), %s1831_s20, 256, %s1833_s11, %s1839_s10, %s1649_s12, %s1649_s12, %s1650_s14  }
  0x5f   : > { %281 = sbr.rel (%p1738_p8) target bundleno = 889 (0x379), region = 48  ;;  %s1870_s23 = sand.u32 (!%p1738_p8), 1, %s1634_s25  }
  0x60   : > { %s1232_s29 = sshll.u32 (!%p1738_p8), %s1870_s23, 4  ;;  %s284_s18 = scalar_lea.sflag (!%p1738_p8), [#allocation5], %s1870_s23 }
  0x61   : > { %s287_s21 = scalar_lea.vmem (!%p1738_p8), [#allocation4], %s1232_s29  ;;  %p2054_p4 = scmp.ne.s32.totalorder (!%p1738_p8), %s2047_s30, 0 }
  0x66   : > { %1617 = dma.done.wait (%p2054_p4), %s284_s18, 256  }
  0x67   : > { %1619 = vsyncadd (%p2054_p4), %s284_s18, 4294967040  ;;  %p2055_p5 = scmp.eq.s32.totalorder %s1719_s28, 0 }
  0x69   : > { %1621 = dma.done.wait (%p2055_p5), [#allocation8], 5184   ;;  %p2056_p8 = pmov %p2055_p5 }
  0x6a   : > { %vm336_vm0 = vcmask 31744   ;;  %vm339_vm1 = vcmask 589344   ;;  %v1651_v0 = vmov 0.0   ;;  %vm333_vm2 = vcmask 581632   ;;  %v331_v1 = vld [vmem:[%s287_s21] sm:$0xff]  ;;  %v332_v2 = vld [vmem:[%s287_s21 + $0x8] sm:$0xff] }
  0x6b   : > { %1623 = vsyncadd (%p2056_p8), [#allocation8], 4294962112  ;;  %1327 = vmatprep.subr.bf16.mxu0 %v1651_v0  ;;  %1313 = vmatprep.subr.bf16.mxu1 %v1651_v0  ;;  %337 = vst.msk [vmem:[#allocation2 + $0x1] sm:$0xff] %vm336_vm0, %v1651_v0  ;;  %vm1652_vm3 = vmmov 0   ;;  %s1653_s30 = smov 4   ;;  %v1444_v3 = vld [vmem:[#allocation7] sm:$0xff]   ;;  %v637_v47 = vlaneseq }
  0x6c   : > { %338 = vst.msk [vmem:[#allocation2 + $0x9] sm:$0xff] %vm336_vm0, %v1651_v0  ;;  %1323 = vmatprep.mubr.msk.bf16.mxu1 %vm1652_vm3, %v1651_v0  ;;  %1337 = vmatprep.mubr.msk.bf16.mxu0 %vm1652_vm3, %v1651_v0  ;;  %v1445_v4 = vld [vmem:[#allocation7 + $0x24] sm:$0xff]   ;;  %v1447_v6 = vld [vmem:[#allocation7 + $0x2c] sm:$0xff]   ;;  %v1449_v8 = vld [vmem:[#allocation7 + $0x34] sm:$0xff]   ;;  %vm409_vm4 = vcmask 1043456   ;;  %vm350_vm5 = vcmask 556064  }
  0x6d   : > { %340 = vst.msk [vmem:[#allocation2 + $0x1] sm:$0xff] %vm339_vm1, %v1651_v0  ;;  %341 = vst.msk [vmem:[#allocation2 + $0x9] sm:$0xff] %vm339_vm1, %v1651_v0  ;;  %344 = vrot.lane.b32.xlu0 %v331_v1, %s1653_s30  ;;  %1328 = vmatpush3.bf16.msra.mxu0 %v1444_v3  ;;  %v1446_v5 = vld [vmem:[#allocation7 + $0x8] sm:$0xff]   ;;  %v1448_v7 = vld [vmem:[#allocation7 + $0x10] sm:$0xff]   ;;  %vm405_vm6 = vcmask 588800   ;;  %vm646_vm7 = vcmask 64513  }
  0x6e   : > { %334 = vst.msk [vmem:[#allocation2] sm:$0x1] %vm333_vm2, %v1651_v0  ;;  %335 = vst.msk [vmem:[#allocation2 + $0x11] sm:$0x1] %vm333_vm2, %v1651_v0  ;;  %1314 = vmatpush3.bf16.msra.mxu1 %v1445_v4  ;;  %1329 = vmatprep.subr.bf16.mxu0 %v1651_v0  ;;  %v1450_v9 = vld [vmem:[#allocation7 + $0x18] sm:$0xff]   ;;  %v1454_v18 = vld [vmem:[#allocation7 + $0x48] sm:$0xff]  }
  0x6f   : > { %1315 = vmatprep.subr.bf16.mxu1 %v1651_v0  ;;  %v1451_v10 = vld [vmem:[#allocation7 + $0x3c] sm:$0xff]   ;;  %v1453_v12 = vld [vmem:[#allocation7 + $0x44] ss:$0 sps:$4 sm:$0xff]   ;;  %v1455_v24 = vld [vmem:[#allocation7 + $0x50] sm:$0xff]   ;;  %vm652_vm8 = vcmask 130113   ;;  %v1654_v34 = vmov 0  }
  0x70   : > { %v1452_v11 = vld [vmem:[#allocation7 + $0x20] ss:$0 sps:$4 sm:$0xff]   ;;  %v411_v14 = vsel %vm409_vm4, %v1453_v12, 0  ;;  %v1456_v25 = vld [vmem:[#allocation7 + $0x58] sm:$0xff]   ;;  %v1458_v27 = vld [vmem:[#allocation7 + $0x68] ss:$0 sps:$4 sm:$0xff]  }
  0x71   : > { %346 = vrot.lane.b32.xlu0 %v332_v2, %s1653_s30  ;;  %1330 = vmatpush3.bf16.msra.mxu0 %v1446_v5  ;;  %v485_v13 = vsel %vm409_vm4, %v1452_v11, 0  ;;  %v1457_v26 = vld [vmem:[#allocation7 + $0x60] sm:$0xff]   ;;  %v572_v28 = vsel %vm409_vm4, %v1458_v27, 0  ;;  %v1459_v32 = vld [vmem:[#allocation9] sm:$0xff]   ;;  %v1461_v33 = vld [vmem:[#allocation9 + $0x48] sm:$0xff]   ;;  %vm639_vm9 = vcmp.lt.s32.totalorder %v637_v47, 144 }
  0x72   : > { %1316 = vmatpush3.bf16.msra.mxu1 %v1447_v6  ;;  %1331 = vmatprep.subr.bf16.mxu0 %v1651_v0  ;;  %647 = vst.msk [vmem:[#allocation3] sm:$0xfe] %vm646_vm7, %v1651_v0  ;;  %v1460_v35 = vld [vmem:[#allocation9 + $0x8] sm:$0xff]   ;;  %v1463_v36 = vld [vmem:[#allocation9 + $0x50] sm:$0xff]   ;;  %v1465_v38 = vld [vmem:[#allocation9 + $0x58] sm:$0xff]   ;;  %vm650_vm10 = vcmask 57344  }
  0x73   : > { %1317 = vmatprep.subr.bf16.mxu1 %v1651_v0  ;;  %653 = vst.msk [vmem:[#allocation3 + $0x8] sm:$0xfe] %vm652_vm8, %v1651_v0  ;;  %v1462_v37 = vld [vmem:[#allocation9 + $0x10] sm:$0xff]   ;;  %v1464_v39 = vld [vmem:[#allocation9 + $0x18] sm:$0xff]   ;;  %v1467_v40 = vld [vmem:[#allocation9 + $0x60] sm:$0xff]   ;;  %vm656_vm11 = vcmask 122944  }
  0x74   : > { %v1466_v41 = vld [vmem:[#allocation9 + $0x20] sm:$0xff]   ;;  %v1468_v42 = vld [vmem:[#allocation9 + $0x28] sm:$0xff]   ;;  %641 = vst.msk [vmem:[#allocation3] ss:$8 sm:$0x3] %vm639_vm9, %v1651_v0  ;;  %v1470_v52 = vld [vmem:[#allocation9 + $0x30] sm:$0xff]  }
  0x75   : > { %1332 = vmatpush3.bf16.msra.mxu0 %v1448_v7  ;;  %644 = vst.msk [vmem:[#allocation3 + $0x21] ss:$8 sm:$0x3] %vm639_vm9, %v1651_v0  ;;  %v1469_v51 = vld [vmem:[#allocation9 + $0x68] sm:$0xff]   ;;  %vm648_vm12 = vcmask 64512   ;;  %vm654_vm13 = vcmask 130112  }
  0x76   : > { %1318 = vmatpush3.bf16.msra.mxu1 %v1449_v8  ;;  %1333 = vmatprep.subr.bf16.mxu0 %v1651_v0  ;;  %651 = vst.msk [vmem:[#allocation3 + $0x20] sm:$0x1] %vm650_vm10, %v1651_v0  ;;  %v1254_v57 = vld [vmem:[%s2038_s2] ss:$0 sm:$0xff]  ;;  %v1471_v58 = vld [vmem:[#allocation9 + $0x70] sm:$0xff]   ;;  %v1472_v59 = vld [vmem:[#allocation9 + $0x38] sm:$0xff]  }
  0x77   : > { %1319 = vmatprep.subr.bf16.mxu1 %v1651_v0  ;;  %657 = vst.msk [vmem:[#allocation3 + $0x28] sm:$0x1] %vm656_vm11, %v1651_v0  ;;  %v1255_v62 = vld [vmem:[%s2039_s3] ss:$0 sm:$0xff]  ;;  %v1474_v2 = vld [vmem:[#allocation9 + $0x40] sm:$0xff]   ;;  %vm660_vm14 = vcmask 1040384  }
  0x78   : > { %649 = vst.msk [vmem:[#allocation3 + $0x10] sm:$0xff] %vm648_vm12, %v1651_v0  ;;  %s1655_s10 = smov 8   ;;  %v1475_v8 = vld [vmem:[#allocation9 + $0x80] sm:$0xff]   ;;  %vm673_vm15 = vcmask 1047617   ;;  %vm679_vm0 = vcmask 1040448   ;;  %vm676_vm1 = vcmask 1047616  }
  0x79   : > { %1334 = vmatpush3.bf16.msra.mxu0 %v1450_v9  ;;  %655 = vst.msk [vmem:[#allocation3 + $0x18] sm:$0xff] %vm654_vm13, %v1651_v0  ;;  %vm813_vm2 = vcmask 130048   ;;  %vm733_vm4 = vsmask.f32 7424  ;;  %s1294_s18 = sshll.u32 %s1719_s28, 8  ;;  %s325_s21 = scalar_lea.vmem [#allocation10], %s1232_s29 }
  0x7a   : > { %1320 = vmatpush3.bf16.msra.mxu1 %v1451_v10  ;;  %1335 = vmatprep.subr.bf16.mxu0 %v1651_v0  ;;  %v1477_v10 = vld [vmem:[#allocation9 + $0x88] sm:$0xff]   ;;  %s1131_s30 = sshll.u32 %s325_s21, 4  ;;  %s1989_s11 = scalar_lea.hbm %s2043_s7, %s1294_s18  ;;  %s1991_s30 = int_to_ptr.vmem [resolvable:$true] %s1131_s30 }
  0x7b   : > { %1321 = vmatprep.subr.bf16.mxu1 %v1651_v0  ;;  %s1118_s22 = scalar_lea.sflag [#allocation6], %s1870_s23  ;;  %s1572_s28 = scalar_lea.vmem %s1991_s30, 256 }
  0x7c   : > { %p1573_p11 = scmp.ne.s32.totalorder %s1991_s30, %s1572_s28  ;;  %p2057_p0 = scmp.ne.s32.totalorder %s2052_s16, 0 }
  0x7d   : > { %1336 = vmatpush3.bf16.msra.mxu0 %v485_v13  ;;  %s1656_s29 = smov [#allocation10]  }
  0x7e   : > { %1322 = vmatpush3.bf16.msra.mxu1 %v411_v14  ;;  %1341 = vmatprep.subr.bf16.mxu0 %v1651_v0  ;;  %p1574_p1 = pnand %p1573_p11, %p2057_p0  ;;  %s1576_s15 = sshll.u32 %s1656_s29, 4  ;;  %s1577_s15 = int_to_ptr.vmem [resolvable:$false] %s1576_s15 }
  0x7f   : > { %915 = vmatprep.subr.bf16.mxu1 %v1654_v34  ;;  %s1578_s19 = scalar_lea.vmem %s1577_s15, 512  ;;  %p1579_p7 = scmp.lt.s32.totalorder %s1991_s30, %s1577_s15 }
  0x80   : > { %p1575_p3 = pneg %p1574_p1  ;;  %p1580_p9 = scmp.lt.s32.totalorder %s1578_s19, %s1572_s28 }
  0x82   : > { %p1581_p12 = por %p1580_p9, %p1579_p7 }
  0x84   : > { %p1582_p2 = pnand %p1581_p12, %p1575_p3 }
  0xdf   : > { %v345_v15 = vpop.permute.xlu0 %344 }
  0xe0   : > { %351 = vst.msk [vmem:[#allocation2 + $0x1] sm:$0xff] %vm350_vm5, %v345_v15 }
  0xe3   : > { %v347_v16 = vpop.permute.xlu0 %346 }
  0xe4   : > { %352 = vst.msk [vmem:[#allocation2 + $0x9] sm:$0xff] %vm350_vm5, %v347_v16 }
  0xe7   : > { %v365_v17 = vld [vmem:[#allocation2 + $0x1] sm:$0xff] }
  0xe8   : > { %v353_v20 = vld [vmem:[#allocation2] sm:$0xff] }
  0xeb   : > { %v366_v19 = vld [vmem:[#allocation2 + $0x9] sm:$0xff] }
  0xec   : > { %v354_v21 = vld [vmem:[#allocation2 + $0x8] sm:$0xff]  ;;  %v367_v22 = vpack.c.bf16 %v366_v19, %v365_v17 }
  0xed   : > { %v355_v23 = vpack.c.bf16 %v354_v21, %v353_v20  ;;  %v528_v29 = vld [vmem:[#allocation2 + $0x2] sm:$0xff]  ;;  %v529_v30 = vld [vmem:[#allocation2 + $0xa] sm:$0xff] }
  0xee   : > { %1324 = vmatmul.mubr.msk.bf16.vlgmr.msra.gmra.mrb[0].mxu1 %vm405_vm6, %v367_v22  ;;  %v530_v31 = vpack.c.bf16 %v529_v30, %v528_v29 }
  0xef   : > { %1338 = vmatmul.mubr.msk.bf16.vlgmr.msra.gmra.mrb[0].mxu0 %vm405_vm6, %v355_v23  ;;  %916 = vmatpush1.bf16.msra.mxu1 %v1459_v32 }
  0xf0   : > { %1342 = vmatpush3.bf16.msra.mxu0 %v1454_v18  ;;  %1351 = vmatprep.mubr.msk.bf16.mxu0 %vm1652_vm3, %v1651_v0  ;;  %vm987_vm3 = vcmask 1046528  }
  0xf1   : > { %1343 = vmatprep.subr.bf16.mxu0 %v1651_v0  ;;  %917 = vmatprep.subr.bf16.mxu1 %v1654_v34 }
  0xf3   : > { %918 = vmatpush1.bf16.msra.mxu1 %v1460_v35 }
  0xf4   : > { %1344 = vmatpush3.bf16.msra.mxu0 %v1455_v24  ;;  %919 = vmatprep.subr.bf16.mxu1 %v1654_v34 }
  0xf5   : > { %1345 = vmatprep.subr.bf16.mxu0 %v1651_v0 }
  0xf7   : > { %920 = vmatpush1.bf16.msra.mxu1 %v1462_v37 }
  0xf8   : > { %1346 = vmatpush3.bf16.msra.mxu0 %v1456_v25  ;;  %921 = vmatprep.subr.bf16.mxu1 %v1654_v34 }
  0xf9   : > { %1347 = vmatprep.subr.bf16.mxu0 %v1651_v0 }
  0xfb   : > { %922 = vmatpush1.bf16.msra.mxu1 %v1464_v39  ;;  %v1478_v39 = vld [vmem:[#allocation9 + $0x98] sm:$0xff]  }
  0xfc   : > { %1348 = vmatpush3.bf16.msra.mxu0 %v1457_v26  ;;  %923 = vmatprep.subr.bf16.mxu1 %v1654_v34  ;;  %v1476_v26 = vld [vmem:[#allocation9 + $0x90] sm:$0xff]  }
  0xfd   : > { %1349 = vmatprep.subr.bf16.mxu0 %v1651_v0  ;;  %v1473_v0 = vld [vmem:[#allocation9 + $0x78] sm:$0xff]  }
  0xff   : > { %924 = vmatpush1.bf16.msra.mxu1 %v1466_v41 }
 0x100   : > { %1350 = vmatpush3.bf16.msra.mxu0 %v572_v28  ;;  %925 = vmatprep.subr.bf16.mxu1 %v1654_v34 }
 0x101   : > { %817 = vmatprep.subr.bf16.mxu0 %v1654_v34 }
 0x103   : > { %1352 = vmatmul.mubr.msk.bf16.vlgmr.msra.gmra.mrb[0].mxu0 %vm405_vm6, %v530_v31  ;;  %926 = vmatpush1.bf16.msra.mxu1 %v1468_v42 }
 0x104   : > { %818 = vmatpush1.bf16.msra.mxu0 %v1461_v33  ;;  %927 = vmatprep.subr.bf16.mxu1 %v1654_v34 }
 0x105   : > { %819 = vmatprep.subr.bf16.mxu0 %v1654_v34 }
 0x107   : > { %928 = vmatpush1.bf16.msra.mxu1 %v1470_v52 }
 0x108   : > { %820 = vmatpush1.bf16.msra.mxu0 %v1463_v36  ;;  %929 = vmatprep.subr.bf16.mxu1 %v1654_v34 }
 0x109   : > { %821 = vmatprep.subr.bf16.mxu0 %v1654_v34 }
 0x10b   : > { %930 = vmatpush1.bf16.msra.mxu1 %v1472_v59 }
 0x10c   : > { %822 = vmatpush1.bf16.msra.mxu0 %v1465_v38  ;;  %931 = vmatprep.subr.bf16.mxu1 %v1654_v34 }
 0x10d   : > { %823 = vmatprep.subr.bf16.mxu0 %v1654_v34 }
 0x10f   : > { %932 = vmatpush1.bf16.msra.mxu1 %v1474_v2 }
 0x110   : > { %824 = vmatpush1.bf16.msra.mxu0 %v1467_v40  ;;  %1052 = vmatprep.subr.bf16.mxu1 %v1654_v34 }
 0x111   : > { %825 = vmatprep.subr.bf16.mxu0 %v1654_v34 }
 0x114   : > { %826 = vmatpush1.bf16.msra.mxu0 %v1469_v51 }
 0x115   : > { %827 = vmatprep.subr.bf16.mxu0 %v1654_v34 }
 0x118   : > { %828 = vmatpush1.bf16.msra.mxu0 %v1471_v58 }
 0x119   : > { %829 = vmatprep.subr.bf16.mxu0 %v1654_v34 }
 0x11c   : > { %830 = vmatpush1.bf16.msra.mxu0 %v1473_v0 }
 0x11d   : > { %831 = vmatprep.subr.bf16.mxu0 %v1654_v34 }
 0x120   : > { %832 = vmatpush1.bf16.msra.mxu0 %v1475_v8 }
 0x121   : > { %833 = vmatprep.subr.bf16.mxu0 %v1654_v34 }
 0x124   : > { %834 = vmatpush1.bf16.msra.mxu0 %v1477_v10 }
 0x1c1   : > { %v447_v43 = vpop.f32.mrb[0].mxu1 }
 0x1c2   : > { %v1325_v44 = vpop.f32.mrb[1].mxu1 }
 0x1c3   : > { %v450_v45 = vpop.f32.mrb[2].mxu1 }
 0x1c4   : > { %v1326_v46 = vpop.f32.mrb[3].mxu1 }
 0x1d6   : > { %v608_v48 = vpop.f32.mrb[0].mxu0 }
 0x1d7   : > { %v1355_v49 = vadd.f32 %v608_v48, %v447_v43  ;;  %v1353_v50 = vpop.f32.mrb[1].mxu0 }
 0x1d8   : > { %v611_v53 = vpop.f32.mrb[2].mxu0  ;;  %v1479_v50 = vld [vmem:[#allocation9 + $0xa0] sm:$0xff]  }
 0x1d9   : > { %v617_v54 = vmul.f32 0.2, %v1355_v49  ;;  %v1356_v55 = vadd.f32 %v611_v53, %v450_v45  ;;  %v1354_v56 = vpop.f32.mrb[3].mxu0  ;;  %v1480_v53 = vld [vmem:[#allocation9 + $0xa8] sm:$0xff]  }
 0x1da   : > { %v1483_v56 = vld [vmem:[#allocation9 + $0xc0] sm:$0xff]  }
 0x1db   : > { %v619_v60 = vmax.f32 %v1355_v49, %v617_v54  ;;  %v618_v61 = vmul.f32 0.2, %v1356_v55  ;;  %v1481_v54 = vld [vmem:[#allocation9 + $0xb0] sm:$0xff]  }
 0x1dd   : > { %v620_v63 = vmax.f32 %v1356_v55, %v618_v61  ;;  %v627_v1 = vmul.f32 %v1254_v57, %v619_v60  ;;  %v1482_v55 = vld [vmem:[#allocation9 + $0xb8] sm:$0xff]   ;;  %v1485_v61 = vld [vmem:[#allocation9 + $0xd0] sm:$0xff]  }
 0x1df   : > { %v628_v3 = vmul.f32 %v1254_v57, %v620_v63  ;;  %v635_v4 = vadd.f32 %v1255_v62, %v627_v1  ;;  %v1484_v57 = vld [vmem:[#allocation9 + $0xc8] sm:$0xff]  }
 0x1e1   : > { %v636_v5 = vadd.f32 %v1255_v62, %v628_v3  ;;  %v661_v6 = vrot.slane %v635_v4, 7 }
 0x1e3   : > { %664 = vrot.lane.b32.xlu1 %v661_v6, %s1655_s10  ;;  %v662_v7 = vrot.slane %v636_v5, 7 }
 0x1e5   : > { %668 = vrot.lane.b32.xlu0 %v662_v7, %s1655_s10  ;;  %v663_v9 = vsel %vm660_vm14, %v661_v6, %v662_v7 }
 0x1e7   : > { %666 = vrot.lane.b32.xlu1 %v663_v9, %s1655_s10 }
 0x255   : > { %v665_v11 = vpop.permute.xlu1 %664 }
 0x256   : > { %674 = vst.msk [vmem:[#allocation3] sm:$0xfe] %vm673_vm15, %v665_v11 }
 0x257   : > { %675 = vst.msk [vmem:[#allocation3 + $0x8] sm:$0xfe] %vm646_vm7, %v665_v11  ;;  %v669_v12 = vpop.permute.xlu0 %668 }
 0x258   : > { %680 = vst.msk [vmem:[#allocation3 + $0x20] sm:$0x1] %vm679_vm0, %v669_v12 }
 0x259   : > { %681 = vst.msk [vmem:[#allocation3 + $0x28] sm:$0x1] %vm650_vm10, %v669_v12  ;;  %v667_v13 = vpop.permute.xlu1 %666 }
 0x25a   : > { %677 = vst.msk [vmem:[#allocation3 + $0x10] sm:$0xff] %vm676_vm1, %v667_v13 }
 0x25b   : > { %678 = vst.msk [vmem:[#allocation3 + $0x18] sm:$0xff] %vm648_vm12, %v667_v13 }
 0x25d   : > { %v682_v18 = vld [vmem:[#allocation3] sm:$0xff] }
 0x25e   : > { %v683_v17 = vld [vmem:[#allocation3 + $0x8] sm:$0xff]  ;;  %v706_v29 = vld [vmem:[#allocation3] sm:$0xfe] }
 0x25f   : > { %v708_v16 = vld [vmem:[#allocation3 + $0x20] sm:$0x1]  ;;  %v957_v22 = vld [vmem:[#allocation3 + $0x8] sm:$0xfc]  ;;  %v956_v58 = vld [vmem:[#allocation3] sm:$0xfc] }
 0x260   : > { %v959_v14 = vld [vmem:[#allocation3 + $0x28] sm:$0x3]  ;;  %v712_v30 = vpack.c.bf16 %v708_v16, %v708_v16  ;;  %v958_v59 = vld [vmem:[#allocation3 + $0x20] sm:$0x3] }
 0x261   : > { %v709_v15 = vld [vmem:[#allocation3 + $0x28] sm:$0x1]  ;;  %v963_v19 = vpack.c.bf16 %v959_v14, %v959_v14  ;;  %v1959_v21 = vld [vmem:[#allocation3 + $0x10] sm:$0xff]  ;;  %v707_v28 = vld [vmem:[#allocation3 + $0x8] sm:$0xfe]  ;;  %v962_v62 = vpack.c.bf16 %v958_v59, %v958_v59 }
 0x262   : > { %v685_v20 = vld [vmem:[#allocation3 + $0x18] sm:$0xff]  ;;  %v713_v23 = vpack.c.bf16 %v709_v15, %v709_v15  ;;  %v686_v25 = vpack.c.bf16 %v1959_v21, %v682_v18  ;;  %v710_v32 = vpack.c.bf16 %v1959_v21, %v706_v29  ;;  %v742_v41 = vshll.u32 %v712_v30, 16  ;;  %v1287_v15 = vld [vmem:[%s2042_s6] ss:$0 sm:$0xff] }
 0x263   : > { %v687_v24 = vpack.c.bf16 %v685_v20, %v683_v17  ;;  %v961_v27 = vpack.c.bf16 %v685_v20, %v957_v22  ;;  %v711_v31 = vpack.c.bf16 %v685_v20, %v707_v28  ;;  %v992_v35 = vrot.slane %v963_v19, 1 }
 0x264   : > { %v754_v37 = vshll.u32 %v713_v23, 16  ;;  %v737_v40 = vshll.u32 %v710_v32, 16  ;;  %v735_v44 = vshrl.u32 %v710_v32, 16  ;;  %v744_v49 = vrot.slane %v742_v41, 1 }
 0x265   : > { %1275 = vmatprep.mubr.msk.bf16.mxu1 %vm813_vm2, %v687_v24  ;;  %v991_v33 = vrot.slane %v961_v27, 1  ;;  %v749_v36 = vshll.u32 %v711_v31, 16  ;;  %v747_v42 = vshrl.u32 %v711_v31, 16  ;;  %v960_v60 = vpack.c.bf16 %v1959_v21, %v956_v58 }
 0x266   : > { %948 = vmatmul.mubr.bf16.vlgmr.msra.gmra.mrb[4].mxu1 %v686_v25  ;;  %v739_v45 = vrot.slane %v737_v40, 1  ;;  %v756_v47 = vrot.slane %v754_v37, 1  ;;  %v989_v1 = vrot.slane %v962_v62, 1 }
 0x267   : > { %1053 = vmatpush1.bf16.msra.mxu1 %v1476_v26  ;;  %v993_v38 = vsel %vm987_vm3, %v991_v33, %v992_v35  ;;  %v751_v43 = vrot.slane %v749_v36, 1  ;;  %v988_v63 = vrot.slane %v960_v60, 1 }
 0x268   : > { %1285 = vmatprep.mubr.msk.bf16.mxu1 %vm813_vm2, %v993_v38  ;;  %1054 = vmatprep.subr.bf16.mxu1 %v1654_v34  ;;  %v740_v48 = vor.u32 %v739_v45, %v735_v44 }
 0x269   : > { %v752_v46 = vor.u32 %v751_v43, %v747_v42  ;;  %v990_v0 = vsel %vm987_vm3, %v988_v63, %v989_v1 }
 0x26a   : > { %v745_v52 = vsel %vm733_vm4, %v740_v48, %v744_v49 }
 0x26b   : > { %1055 = vmatpush1.bf16.msra.mxu1 %v1478_v39  ;;  %v757_v51 = vsel %vm733_vm4, %v752_v46, %v756_v47 }
 0x26c   : > { %1056 = vmatprep.subr.bf16.mxu1 %v1654_v34  ;;  %1265 = vmatprep.mubr.msk.bf16.mxu0 %vm813_vm2, %v757_v51 }
 0x26d   : > { %850 = vmatmul.mubr.bf16.vlgmr.msra.gmra.mrb[4].mxu0 %v745_v52 }
 0x26f   : > { %1057 = vmatpush1.bf16.msra.mxu1 %v1479_v50 }
 0x270   : > { %1058 = vmatprep.subr.bf16.mxu1 %v1654_v34 }
 0x273   : > { %1059 = vmatpush1.bf16.msra.mxu1 %v1480_v53 }
 0x274   : > { %1060 = vmatprep.subr.bf16.mxu1 %v1654_v34 }
 0x277   : > { %1061 = vmatpush1.bf16.msra.mxu1 %v1481_v54 }
 0x278   : > { %1062 = vmatprep.subr.bf16.mxu1 %v1654_v34 }
 0x27b   : > { %1063 = vmatpush1.bf16.msra.mxu1 %v1482_v55 }
 0x27c   : > { %1064 = vmatprep.subr.bf16.mxu1 %v1654_v34 }
 0x27f   : > { %1065 = vmatpush1.bf16.msra.mxu1 %v1483_v56 }
 0x280   : > { %1066 = vmatprep.subr.bf16.mxu1 %v1654_v34 }
 0x283   : > { %1067 = vmatpush1.bf16.msra.mxu1 %v1484_v57 }
 0x284   : > { %1068 = vmatprep.subr.bf16.mxu1 %v1654_v34  ;;  %v1286_v34 = vld [vmem:[%s2041_s5] ss:$0 sm:$0xff] }
 0x287   : > { %1069 = vmatpush1.bf16.msra.mxu1 %v1485_v61 }
 0x28a   : > { %1085 = vmatmul.mubr.bf16.vlgmr.msra.gmra.mrb[4].mxu1 %v990_v0 }
 0x340   : > { %v851_v2 = vpop.f32.mrb[4].mxu0 }
 0x341   : > { %v853_v3 = vpop.f32.mrb[5].mxu0 }
 0x342   : > { %v854_v4 = vpop.f32.mrb[6].mxu0 }
 0x343   : > { %v856_v5 = vpop.f32.mrb[7].mxu0 }
 0x35d   : > { %v1086_v6 = vpop.f32.mrb[4].mxu1 }
 0x35e   : > { %v1357_v7 = vadd.f32 %v1086_v6, %v851_v2  ;;  %v1088_v8 = vpop.f32.mrb[5].mxu1 }
 0x35f   : > { %v1089_v9 = vpop.f32.mrb[6].mxu1 }
 0x360   : > { %v1095_v10 = vmul.f32 0.2, %v1357_v7  ;;  %v1358_v11 = vadd.f32 %v1089_v9, %v854_v4  ;;  %v1091_v12 = vpop.f32.mrb[7].mxu1 }
 0x362   : > { %v1097_v13 = vmax.f32 %v1357_v7, %v1095_v10  ;;  %v1096_v14 = vmul.f32 0.2, %v1358_v11 }
 0x364   : > { %v1105_v16 = vmul.f32 %v1286_v34, %v1097_v13  ;;  %v1098_v17 = vmax.f32 %v1358_v11, %v1096_v14 }
 0x366   : > { %v1113_v18 = vadd.f32 %v1287_v15, %v1105_v16  ;;  %v1106_v19 = vmul.f32 %v1286_v34, %v1098_v17 }
 0x368   : > { %1115 = vst [vmem:[%s325_s21] sm:$0xff] %v1113_v18  ;;  %v1114_v20 = vadd.f32 %v1287_v15, %v1106_v19 }
 0x36a   : > { %1116 = vst [vmem:[%s325_s21 + $0x8] sm:$0xff] %v1114_v20 }
 0x36b   : > { %1585 = shalt.err (!%p1582_p2)
}
 0x36c   : > { %s1586_s12 = scalar_lea.hbm %s1989_s11, 256  ;;  %s1590_s21 = scalar_lea.hbm %s2043_s7, 512 }
 0x36d   : > { %p1587_p13 = scmp.ne.s32.totalorder %s1989_s11, %s1586_s12  ;;  %p1591_p4 = scmp.lt.u32.totalorder %s1989_s11, %s2043_s7 }
 0x36e   : > { %p1592_p5 = scmp.lt.u32.totalorder %s1590_s21, %s1586_s12  ;;  %p1594_p11 = scmp.lt.u32.totalorder %s1586_s12, %s1989_s11 }
 0x36f   : > { %p1588_p6 = pnand %p1587_p13, %p2057_p0 }
 0x370   : > { %p1593_p8 = por %p1592_p5, %p1591_p4 }
 0x371   : > { %p1589_p10 = pneg %p1588_p6 }
 0x372   : > { %p1595_p1 = por %p1594_p11, %p1593_p8 }
 0x374   : > { %p1596_p3 = pnand %p1595_p1, %p1589_p10 }
 0x376   : > { %1599 = shalt.err (!%p1596_p3)
}
 0x377   : > { %s1657_s28 = smov 128  }
 0x378   : > { %1377 = dma.vmem_to_hbm [thread:$0]  (%p2057_p0), %s1991_s30, 256, %s1989_s11, %s1118_s22, %s1657_s28, %s1657_s28, %s1655_s10  }
 0x379 PF: > { %s1146_s29 = sand.u32 1, %s1630_s24   ;;  %p2058_p7 = scmp.ne.s32.totalorder %s2048_s8, 0 }
 0x37a   : > { %p2059_p9 = scmp.ge.s32.totalorder %s1642_s27, 2  ;;  %s1147_s15 = scalar_lea.sflag [#allocation6], %s1146_s29 }
 0x37c   : > { %p1391_p12 = pnand %p2059_p9, %p2058_p7 }
 0x37e   : > { %1625 = dma.done.wait (!%p1391_p12), %s1147_s15, 256  }
 0x37f   : > { %1627 = vsyncadd (!%p1391_p12), %s1147_s15, 4294967040  ;;  %p21_p2 = scmp.ge.s32.totalorder %s1808_s13, 4   ;;  %s2060_s24 = smov %s1634_s25 }
 0x380   : > { %s2061_s25 = smov %s1638_s26  ;;  %s2062_s26 = smov %s1824_s17 }
 0x381   : > { %s2063_s27 = smov %s1808_s13  ;;  %23 = sbr.rel (!%p21_p2) target bundleno = 6 (0x6), region = 106 }
 0x388   :  { %1152 = vsyncpa [#allocation5], 1 }
 0x389   :  { %1154 = vsyncpa [#allocation5 + $0x1], 1 }
 0x38a   :  { %1155 = vsyncpa [#allocation8], 1 }
 0x38b   :  { %1156 = vsyncpa [#allocation6], 1 }
 0x38c   :  { %1158 = vsyncpa [#allocation6 + $0x1], 1 }

</bundles_post_ra>
